<compile_context>
chip_gen: v5e
topology: v5e:2x2
jax: 0.10.0
libtpu: 0.0.40
codegen_flags: <defaults>
</compile_context>

<pallas_src>
import functools

import jax
import jax.numpy as jnp
from jax.experimental import pallas as pl
from jax.experimental.pallas import tpu as pltpu


def _round_up(x, m):
    return ((x + m - 1) // m) * m


def cnn_kernel(l_pad, emb_dim, k_dim, output_dim,
               emb_ref, convw_ref, fcw_ref, add_ref, out_ref):
    """One batch tile of the whole forward pass.

    emb_ref  : (Bt, flat_w)        bf16  lane-dense flattened embeddings
    convw_ref: (k_dim, F_PAD)      bf16  merged im2col conv weight
    fcw_ref  : (F_PAD, OUT_PAD)    bf16  fc weight (+ fc bias in the "1" lane)
    add_ref  : (l_pad, F_PAD)      f32   conv bias where (window, column) is
                                          valid, -1e9 otherwise, 1.0 in the
                                          spare fc-bias lane at window 0
    out_ref  : (Bt, OUT_PAD)       f32   softmax probabilities (lanes >= out
                                          dim are padding)
    """
    emb = emb_ref[...]                               # (Bt, flat_w) bf16
    bt = emb.shape[0]

    # im2col: window p covers lanes [p*E, p*E + K) of the flattened row.
    # Stack windows along the leading (non-sublane) axis: construction is
    # contiguous appends and the pool below is an elementwise max.
    slab = jnp.concatenate(
        [emb[:, p * emb_dim: p * emb_dim + k_dim] for p in range(l_pad)],
        axis=0)                                      # (l_pad*Bt, K) bf16

    # Single merged conv matmul (all filter sizes' filters as columns).
    conv = jnp.dot(slab, convw_ref[...],
                   preferred_element_type=jnp.float32)     # (l_pad*Bt, F_PAD)
    conv = conv.reshape(l_pad, bt, -1)                     # (l_pad, Bt, F_PAD)

    # Bias + validity mask in one add: invalid (window, column) pairs get -1e9
    # so ReLU zeroes them — exact, since every valid pooled value is >= 0.
    conv = jnp.maximum(conv + add_ref[...][:, None, :], 0.0)
    pooled = jnp.max(conv, axis=0)                         # (Bt, F_PAD)

    # Concat-free FC: pooled column order already matches fc weight row order;
    # fc bias rides on the constant-1 pooled lane.  bf16 operands, f32 acc.
    logits = jnp.dot(pooled.astype(jnp.bfloat16), fcw_ref[...],
                     preferred_element_type=jnp.float32)   # (Bt, OUT_PAD)

    # Mask padded logit lanes, then row-wise stable softmax (nn.Softmax picks
    # dim=1 for a 2-D input).  Exact normalization (epilogue is tiny).
    lane = jax.lax.broadcasted_iota(jnp.int32, logits.shape, 1)
    logits = jnp.where(lane < output_dim, logits, -1e30)
    z = logits - jnp.max(logits, axis=-1, keepdims=True)
    ez = jnp.exp(z)
    out_ref[...] = ez / jnp.sum(ez, axis=-1, keepdims=True)
    # TODO(synk): dropout is identity at inference (eval mode), so it is omitted.


def cnn_forward(text, emb_table, conv_ws, conv_bs, fc_w, fc_b, filter_sizes,
                *, b_tile=None):
    """text: (B, S) int32, emb_table: (V, E), conv_ws[i]: (F, fs_i, E),
    conv_bs[i]: (F,), fc_w: (n*F, out_dim), fc_b: (out_dim,)."""
    B, S = text.shape
    E = emb_table.shape[1]
    n = len(filter_sizes)
    F = conv_ws[0].shape[0]
    out_dim = fc_w.shape[1]
    fs_min, fs_max = min(filter_sizes), max(filter_sizes)

    F_PAD = 128                      # lane-dense conv/pool width
    OUT_PAD = 128                    # lane-dense logits / output width
    K = fs_max * E                   # merged im2col K (=128 for fs_max=4,E=32)
    L_PAD = _round_up(S - fs_min + 1, 8)            # window positions, 8-sublane pad
    flat_w = _round_up((L_PAD + fs_max - 1) * E, 128)  # lane-dense flattened width
    assert n * F < F_PAD, "need one spare conv column for the fc-bias lane"
    bias_col = n * F

    # ---- batch tiling: ~1 MiB of activation rows per grid step -------------
    if b_tile is None:
        rows_for_1mib = (1024 * 1024) // (flat_w * 2)       # bf16 bytes / row
        b_tile = max(64, min(1024, rows_for_1mib))
        b_tile = min(b_tile, _round_up(B, 16))              # don't overpad tiny B
    b_tile = max(16, _round_up(b_tile, 16))                 # bf16 sublane packing
    B_pad = _round_up(B, b_tile)

    # ---- activations: gather, flatten lane-dense, pad (bf16 over HBM) ------
    emb = emb_table.astype(jnp.bfloat16)[text].reshape(B, S * E)
    emb = jnp.pad(emb, ((0, B_pad - B), (0, flat_w - S * E)))

    # ---- pack merged conv weight, bias/validity, and fc weight -------------
    w_pack = jnp.zeros((K, F_PAD), jnp.float32)
    add = jnp.full((L_PAD, F_PAD), -1e9, jnp.float32)
    fcw = jnp.zeros((F_PAD, OUT_PAD), jnp.float32)
    col = 0
    for fs, w, b in zip(filter_sizes, conv_ws, conv_bs):
        # (F, fs, E) -> im2col rows ordered (token offset k, emb dim e)
        wt = jnp.transpose(w, (1, 2, 0)).reshape(fs * E, F)
        w_pack = w_pack.at[:fs * E, col:col + F].set(wt.astype(jnp.float32))
        L = S - fs + 1                                      # valid windows
        add = add.at[:L, col:col + F].set(
            jnp.broadcast_to(b.astype(jnp.float32), (L, F)))
        col += F
    # fc weight rows follow the torch.cat(pooled) order == our column order.
    fcw = fcw.at[:n * F, :out_dim].set(fc_w.astype(jnp.float32))
    # constant-1 pooled lane carries the fc bias through the fc matmul.
    add = add.at[0, bias_col].set(1.0)
    fcw = fcw.at[bias_col, :out_dim].set(fc_b.astype(jnp.float32))

    w_pack = w_pack.astype(jnp.bfloat16)
    fcw = fcw.astype(jnp.bfloat16)

    kernel = functools.partial(cnn_kernel, L_PAD, E, K, out_dim)
    out = pl.pallas_call(
        kernel,
        out_shape=jax.ShapeDtypeStruct((B_pad, OUT_PAD), jnp.float32),
        grid=(B_pad // b_tile,),
        in_specs=[
            pl.BlockSpec((b_tile, flat_w), lambda i: (i, 0)),   # activations
            pl.BlockSpec((K, F_PAD), lambda i: (0, 0)),         # conv weight
            pl.BlockSpec((F_PAD, OUT_PAD), lambda i: (0, 0)),   # fc weight
            pl.BlockSpec((L_PAD, F_PAD), lambda i: (0, 0)),     # bias/validity
        ],
        out_specs=pl.BlockSpec((b_tile, OUT_PAD), lambda i: (i, 0)),
        compiler_params=pltpu.CompilerParams(
            dimension_semantics=("parallel",),
            vmem_limit_bytes=32 * 1024 * 1024),
    )(emb, w_pack, fcw, add)

    return out[:B, :out_dim]


def cnn_reference(text, emb_table, conv_ws, conv_bs, fc_w, fc_b, filter_sizes):
    """Pure-JAX f32 reference matching the PyTorch forward."""
    emb = emb_table[text].astype(jnp.float32)               # (B, S, E)
    B, S, E = emb.shape
    pooled = []
    for fs, w, b in zip(filter_sizes, conv_ws, conv_bs):
        L = S - fs + 1
        acc = jnp.zeros((B, L, w.shape[0]), jnp.float32)
        for k in range(fs):
            acc = acc + jnp.einsum("ble,fe->blf", emb[:, k:k + L, :], w[:, k, :])
        acc = jnp.maximum(acc + b[None, None, :], 0.0)
        pooled.append(jnp.max(acc, axis=1))
    cat = jnp.concatenate(pooled, axis=1)
    logits = cat @ fc_w + fc_b
    return jax.nn.softmax(logits, axis=-1)


if __name__ == "__main__":
    # Small, module-consistent shapes.
    vocab_size = 50
    embedding_dim = 32
    n_filters = 4
    filter_sizes = (2, 3, 4)
    output_dim = 3
    pad_idx = 0
    batch = 2
    seq_len = 8

    key = jax.random.PRNGKey(0)
    k_emb, k_text, k_fc, *k_convs = jax.random.split(key, 3 + 2 * len(filter_sizes))

    emb_table = 0.1 * jax.random.normal(k_emb, (vocab_size, embedding_dim), jnp.float32)
    emb_table = emb_table.at[pad_idx].set(0.0)   # padding_idx row is zero

    conv_ws, conv_bs = [], []
    for i, fs in enumerate(filter_sizes):
        kw, kb = jax.random.split(k_convs[i])
        # PyTorch conv weight (n_filters, 1, fs, E) stored here as (n_filters, fs, E)
        conv_ws.append(0.1 * jax.random.normal(kw, (n_filters, fs, embedding_dim), jnp.float32))
        conv_bs.append(0.1 * jax.random.normal(kb, (n_filters,), jnp.float32))

    in_features = len(filter_sizes) * n_filters
    kfw, kfb = jax.random.split(k_fc)
    # PyTorch Linear weight is (out, in); stored transposed as (in, out).
    fc_w = 0.1 * jax.random.normal(kfw, (in_features, output_dim), jnp.float32)
    fc_b = 0.1 * jax.random.normal(kfb, (output_dim,), jnp.float32)

    text = jax.random.randint(k_text, (batch, seq_len), 0, vocab_size, dtype=jnp.int32)

    out = cnn_forward(text, emb_table, conv_ws, conv_bs, fc_w, fc_b, filter_sizes)
    out = jax.block_until_ready(out)

    ref = cnn_reference(text, emb_table, conv_ws, conv_bs, fc_w, fc_b, filter_sizes)

    assert out.shape == (batch, output_dim)
    assert bool(jnp.all(jnp.isfinite(out)))
    # softmax rows sum to ~1 (exact divide in the kernel)
    assert bool(jnp.allclose(jnp.sum(out, axis=-1), 1.0, atol=1e-3))
    # matches pure-JAX reference within bf16 tolerance
    assert bool(jnp.allclose(out, ref, atol=2e-2, rtol=2e-2))

    print("KERNEL_OK")
</pallas_src>

<mosaic_0001>
module attributes {stable_mosaic.version = 11 : i64} {
  func.func @cnn_kernel(%arg0: i32, %arg1: memref<16x384xbf16, #tpu.memory_space<vmem>>, %arg2: memref<128x128xbf16, #tpu.memory_space<vmem>>, %arg3: memref<128x128xbf16, #tpu.memory_space<vmem>>, %arg4: memref<8x128xf32, #tpu.memory_space<vmem>>, %arg5: memref<16x128xf32, #tpu.memory_space<vmem>>) attributes {dimension_semantics = [#tpu.dimension_semantics<parallel>], iteration_bounds = array<i64: 1>, scalar_prefetch = 0 : i64, scratch_operands = 0 : i64, tpu.core_type = #tpu.core_type<tc>, window_params = [{transform_indices = @transform_0, window_bounds = array<i64: 16, 384>}, {pipeline_mode = #tpu.pipeline_mode<synchronous>, transform_indices = @transform_1, window_bounds = array<i64: 128, 128>}, {pipeline_mode = #tpu.pipeline_mode<synchronous>, transform_indices = @transform_2, window_bounds = array<i64: 128, 128>}, {pipeline_mode = #tpu.pipeline_mode<synchronous>, transform_indices = @transform_3, window_bounds = array<i64: 8, 128>}, {transform_indices = @transform_4, window_bounds = array<i64: 16, 128>}]} {
    %c0 = arith.constant 0 : index
    %c0_0 = arith.constant 0 : index
    %0 = vector.load %arg1[%c0, %c0_0] : memref<16x384xbf16, #tpu.memory_space<vmem>>, vector<16x384xbf16>
    %1 = vector.extract_strided_slice %0 {offsets = [0, 0], sizes = [16, 128], strides = [1, 1]} : vector<16x384xbf16> to vector<16x128xbf16>
    %2 = vector.extract_strided_slice %0 {offsets = [0, 32], sizes = [16, 128], strides = [1, 1]} : vector<16x384xbf16> to vector<16x128xbf16>
    %3 = vector.extract_strided_slice %0 {offsets = [0, 64], sizes = [16, 128], strides = [1, 1]} : vector<16x384xbf16> to vector<16x128xbf16>
    %4 = vector.extract_strided_slice %0 {offsets = [0, 96], sizes = [16, 128], strides = [1, 1]} : vector<16x384xbf16> to vector<16x128xbf16>
    %5 = vector.extract_strided_slice %0 {offsets = [0, 128], sizes = [16, 128], strides = [1, 1]} : vector<16x384xbf16> to vector<16x128xbf16>
    %6 = vector.extract_strided_slice %0 {offsets = [0, 160], sizes = [16, 128], strides = [1, 1]} : vector<16x384xbf16> to vector<16x128xbf16>
    %7 = vector.extract_strided_slice %0 {offsets = [0, 192], sizes = [16, 128], strides = [1, 1]} : vector<16x384xbf16> to vector<16x128xbf16>
    %8 = vector.extract_strided_slice %0 {offsets = [0, 224], sizes = [16, 128], strides = [1, 1]} : vector<16x384xbf16> to vector<16x128xbf16>
    %9 = tpu.concatenate %1, %2, %3, %4, %5, %6, %7, %8 in 0 : vector<16x128xbf16>, vector<16x128xbf16>, vector<16x128xbf16>, vector<16x128xbf16>, vector<16x128xbf16>, vector<16x128xbf16>, vector<16x128xbf16>, vector<16x128xbf16> -> vector<128x128xbf16>
    %c0_1 = arith.constant 0 : index
    %c0_2 = arith.constant 0 : index
    %10 = vector.load %arg2[%c0_1, %c0_2] : memref<128x128xbf16, #tpu.memory_space<vmem>>, vector<128x128xbf16>
    %cst = arith.constant dense<0.000000e+00> : vector<128x128xf32>
    %11 = tpu.matmul %9, %10, %cst {dimension_numbers = #tpu.dot_dimension_numbers<[1], [0], [0], [1], [0, 0, 1, 1], [], []>} : vector<128x128xbf16>, vector<128x128xbf16>, vector<128x128xf32> -> vector<128x128xf32>
    %12 = vector.shape_cast %11 : vector<128x128xf32> to vector<8x16x128xf32>
    %c0_3 = arith.constant 0 : index
    %c0_4 = arith.constant 0 : index
    %13 = vector.load %arg4[%c0_3, %c0_4] : memref<8x128xf32, #tpu.memory_space<vmem>>, vector<8x128xf32>
    %14 = vector.shape_cast %13 : vector<8x128xf32> to vector<8x1x128xf32>
    %15 = vector.broadcast %14 : vector<8x1x128xf32> to vector<8x16x128xf32>
    %16 = arith.addf %12, %15 : vector<8x16x128xf32>
    %cst_5 = arith.constant 0.000000e+00 : f32
    %17 = vector.broadcast %cst_5 : f32 to vector<8x16x128xf32>
    %18 = arith.maximumf %16, %17 : vector<8x16x128xf32>
    %cst_6 = arith.constant dense<0xFF800000> : vector<16x128xf32>
    %19 = vector.multi_reduction <maximumf>, %18, %cst_6 [0] : vector<8x16x128xf32> to vector<16x128xf32>
    %20 = arith.truncf %19 : vector<16x128xf32> to vector<16x128xbf16>
    %c0_7 = arith.constant 0 : index
    %c0_8 = arith.constant 0 : index
    %21 = vector.load %arg3[%c0_7, %c0_8] : memref<128x128xbf16, #tpu.memory_space<vmem>>, vector<128x128xbf16>
    %cst_9 = arith.constant dense<0.000000e+00> : vector<16x128xf32>
    %22 = tpu.matmul %20, %21, %cst_9 {dimension_numbers = #tpu.dot_dimension_numbers<[1], [0], [0], [1], [0, 0, 1, 1], [], []>} : vector<16x128xbf16>, vector<128x128xbf16>, vector<16x128xf32> -> vector<16x128xf32>
    %23 = tpu.iota {dimensions = array<i32: 1>} : vector<16x128xi32>
    %c3_i32 = arith.constant 3 : i32
    %24 = vector.broadcast %c3_i32 : i32 to vector<16x128xi32>
    %25 = arith.cmpi slt, %23, %24 : vector<16x128xi32>
    %cst_10 = arith.constant -1.000000e+30 : f32
    %26 = vector.broadcast %cst_10 : f32 to vector<16x128xf32>
    %27 = arith.select %25, %22, %26 : vector<16x128xi1>, vector<16x128xf32>
    %cst_11 = arith.constant dense<0xFF800000> : vector<16xf32>
    %28 = vector.multi_reduction <maximumf>, %27, %cst_11 [1] : vector<16x128xf32> to vector<16xf32>
    %29 = vector.shape_cast %28 : vector<16xf32> to vector<16x1xf32>
    %30 = vector.broadcast %29 : vector<16x1xf32> to vector<16x128xf32>
    %31 = arith.subf %27, %30 : vector<16x128xf32>
    %32 = math.exp %31 : vector<16x128xf32>
    %cst_12 = arith.constant dense<0.000000e+00> : vector<16xf32>
    %33 = vector.multi_reduction <add>, %32, %cst_12 [1] : vector<16x128xf32> to vector<16xf32>
    %34 = vector.shape_cast %33 : vector<16xf32> to vector<16x1xf32>
    %35 = vector.broadcast %34 : vector<16x1xf32> to vector<16x128xf32>
    %36 = arith.divf %32, %35 : vector<16x128xf32>
    %c0_13 = arith.constant 0 : index
    %c0_14 = arith.constant 0 : index
    %37 = vector.load %arg5[%c0_13, %c0_14] : memref<16x128xf32, #tpu.memory_space<vmem>>, vector<16x128xf32>
    tpu.vector_store %arg5[%c0_13, %c0_14], %36 {strides = array<i32>} : memref<16x128xf32, #tpu.memory_space<vmem>>, vector<16x128xf32>,
    return
  }
  func.func @transform_0(%arg0: i32) -> (i32, i32) {
    %c0_i32 = arith.constant 0 : i32
    %c0_i32_0 = arith.constant 0 : i32
    return %arg0, %c0_i32 : i32, i32
  }
  func.func @transform_1(%arg0: i32) -> (i32, i32) {
    %c0_i32 = arith.constant 0 : i32
    %c0_i32_0 = arith.constant 0 : i32
    %c0_i32_1 = arith.constant 0 : i32
    return %c0_i32, %c0_i32_0 : i32, i32
  }
  func.func @transform_2(%arg0: i32) -> (i32, i32) {
    %c0_i32 = arith.constant 0 : i32
    %c0_i32_0 = arith.constant 0 : i32
    %c0_i32_1 = arith.constant 0 : i32
    return %c0_i32, %c0_i32_0 : i32, i32
  }
  func.func @transform_3(%arg0: i32) -> (i32, i32) {
    %c0_i32 = arith.constant 0 : i32
    %c0_i32_0 = arith.constant 0 : i32
    %c0_i32_1 = arith.constant 0 : i32
    return %c0_i32, %c0_i32_0 : i32, i32
  }
  func.func @transform_4(%arg0: i32) -> (i32, i32) {
    %c0_i32 = arith.constant 0 : i32
    %c0_i32_0 = arith.constant 0 : i32
    return %arg0, %c0_i32 : i32, i32
  }
}

</mosaic_0001>

<bundles_post_ra>
// kernel: tpu_custom_call.1
= control target key start
LH: loop header
LB: loop body
LE: loop exit
PB: predicated region body
PF: predicated region fallthrough
CT: control target
= control target key end

     0   :  { %9 = vsyncpa [#allocation3], 0  ;;  %s792_s0 = inlined_call_operand.hbm [shape: bf16[16,384], index: 0, kind: input, shape index: {}]   ;;  %s793_s1 = inlined_call_operand.hbm [shape: bf16[128,128], index: 1, kind: input, shape index: {}]   ;;  %s794_s2 = inlined_call_operand.hbm [shape: bf16[128,128], index: 2, kind: input, shape index: {}]   ;;  %s795_s3 = inlined_call_operand.hbm [shape: f32[8,128], index: 3, kind: input, shape index: {}]   ;;  %s796_s4 = inlined_call_operand.hbm [shape: f32[16,128], index: 4, kind: output, shape index: {}]  }
   0x1   :  { %10 = vsyncpa [#allocation6], 0 }
   0x2   :  { %11 = vsyncpa [#allocation9], 0  ;;  %s30_s17 = sshll.u32 %s793_s1, 4  ;;  %s31_s17 = int_to_ptr.hbm [resolvable:$true] %s30_s17 }
   0x3   :  { %12 = vsyncpa [#allocation4], 0  ;;  %s726_s18 = smov [#allocation5]   ;;  %s17_s22 = sshll.u32 %s792_s0, 4  ;;  %s18_s22 = int_to_ptr.hbm [resolvable:$true] %s17_s22 }
   0x4   :  { %s32_s19 = sshll.u32 %s726_s18, 4  ;;  %s727_s23 = smov 64   ;;  %s33_s19 = int_to_ptr.vmem [resolvable:$true] %s32_s19 }
   0x5   :  { %s728_s24 = smov 4   ;;  %s729_s25 = smov [#allocation2]  }
   0x6   :  { %38 = dma.hbm_to_vmem [thread:$0]  %s31_s17, 1024, %s33_s19, [#allocation6], %s727_s23, %s727_s23, %s728_s24  }
   0x7   :  { %s19_s26 = sshll.u32 %s729_s25, 4  ;;  %s730_s27 = smov 192   ;;  %s20_s26 = int_to_ptr.vmem [resolvable:$true] %s19_s26 }
   0x8   :  { %s731_s1 = smov 12   ;;  %s43_s30 = sshll.u32 %s794_s2, 4  ;;  %s44_s30 = int_to_ptr.hbm [resolvable:$true] %s43_s30 }
   0x9   :  { %25 = dma.hbm_to_vmem [thread:$0]  %s18_s22, 384, %s20_s26, [#allocation3], %s730_s27, %s730_s27, %s731_s1  }
   0xa   :  { %s732_s5 = smov [#allocation7]   ;;  %s57_s8 = sshll.u32 %s795_s3, 4  ;;  %s58_s8 = int_to_ptr.hbm [resolvable:$true] %s57_s8 }
   0xb   :  { %s45_s6 = sshll.u32 %s732_s5, 4  ;;  %s733_s9 = smov [#allocation8]   ;;  %s46_s6 = int_to_ptr.vmem [resolvable:$true] %s45_s6 }
   0xc   :  { %51 = dma.hbm_to_vmem [thread:$0]  %s44_s30, 1024, %s46_s6, [#allocation6], %s727_s23, %s727_s23, %s728_s24  }
   0xd   :  { %s59_s10 = sshll.u32 %s733_s9, 4  ;;  %s60_s10 = int_to_ptr.vmem [resolvable:$true] %s59_s10 }
   0xe   :  { %62 = dma.hbm_to_vmem [thread:$0]  %s58_s8, 128, %s60_s10, [#allocation9]  }
   0xf   :  { %718 = dma.done.wait [#allocation3], 384  }
  0x10   :  { %719 = vsyncadd [#allocation3], 4294966912 }
  0x11   :  { %720 = dma.done.wait [#allocation6], 2048  }
  0x12   :  { %721 = vsyncadd [#allocation6], 4294965248 }
  0x13   :  { %722 = dma.done.wait [#allocation9], 128  }
  0x14   :  { %723 = vsyncadd [#allocation9], 4294967168  ;;  %v468_v0 = vld [vmem:[#allocation2] sm:$0xf]  ;;  %v543_v1 = vld [vmem:[#allocation2 + $0x8] sm:$0xf0] }
  0x15   :  { %v542_v2 = vld [vmem:[#allocation2 + $0x4] sm:$0xf]  ;;  %v469_v3 = vor.u32 %v543_v1, %v468_v0  ;;  %v470_v4 = vld [vmem:[#allocation2 + $0xc] sm:$0xf0]  ;;  %s734_s2 = smov 32   ;;  %s735_s3 = smov 96  }
  0x16   :  { %v780_v5 = vor.u32 %v542_v2, %v470_v4  ;;  %v552_v6 = vld [vmem:[#allocation5 + $0x38] sm:$0xff]  ;;  %v551_v7 = vld [vmem:[#allocation5 + $0x30] sm:$0xff]  ;;  %v550_v11 = vld [vmem:[#allocation5 + $0x28] sm:$0xff]  ;;  %vm96_vm0 = vcmask 785408   ;;  %vm103_vm1 = vcmask 523264   ;;  %vm110_vm2 = vcmask 261120  }
  0x17   :  { %99 = vrot.lane.b32.xlu0 %v469_v3, %s727_s23  ;;  %106 = vrot.lane.b32.xlu2 %v469_v3, %s734_s2  ;;  %v476_v8 = vld [vmem:[#allocation2 + $0x8] sm:$0xf]  ;;  %v544_v9 = vld [vmem:[#allocation2 + $0x10] sm:$0xf0]  ;;  %v549_v12 = vld [vmem:[#allocation5 + $0x20] sm:$0xff]  ;;  %s736_s11 = smov [#allocation10]  }
  0x18   :  { %94 = vrot.lane.b32.xlu1 %v780_v5, %s735_s3  ;;  %195 = vmatpush.bf16.msra.mxu0 %v552_v6  ;;  %v477_v10 = vor.u32 %v544_v9, %v476_v8  ;;  %v548_v13 = vld [vmem:[#allocation5 + $0x18] sm:$0xff]  ;;  %v547_v14 = vld [vmem:[#allocation5 + $0x10] sm:$0xff]  ;;  %v546_v15 = vld [vmem:[#allocation5 + $0x8] sm:$0xff]  ;;  %s449_s12 = sshll.u32 %s736_s11, 4  ;;  %s451_s15 = sshll.u32 %s796_s4, 4  ;;  %s450_s12 = int_to_ptr.vmem [resolvable:$true] %s449_s12  ;;  %s452_s15 = int_to_ptr.hbm [resolvable:$true] %s451_s15 }
  0x19   :  { %561 = vmatpush.bf16.msra.mxu2 %v552_v6  ;;  %562 = vmatpush.bf16.msra.mxu3 %v552_v6  ;;  %v545_v16 = vld [vmem:[#allocation5] sm:$0xff]  ;;  %v560_v32 = vld [vmem:[#allocation7 + $0x38] sm:$0xff]  ;;  %v559_v33 = vld [vmem:[#allocation7 + $0x30] sm:$0xff]  ;;  %s737_s16 = smov 128   ;;  %s738_s17 = smov 8  }
  0x1a   :  { %380 = vmatpush.bf16.msra.mxu1 %v560_v32  ;;  %v558_v34 = vld [vmem:[#allocation7 + $0x28] sm:$0xff]  ;;  %v557_v38 = vld [vmem:[#allocation7 + $0x20] sm:$0xff]  ;;  %v556_v39 = vld [vmem:[#allocation7 + $0x18] sm:$0xff] }
  0x1b   :  { %v555_v42 = vld [vmem:[#allocation7 + $0x10] sm:$0xff]  ;;  %v554_v44 = vld [vmem:[#allocation7 + $0x8] sm:$0xff]  ;;  %v553_v45 = vld [vmem:[#allocation7] sm:$0xff] }
  0x1c   :  { %196 = vmatpush.bf16.msra.mxu0 %v551_v7  ;;  %v244_v49 = vld [vmem:[#allocation8] sm:$0xff] }
  0x1d   :  { %563 = vmatpush.bf16.msra.mxu2 %v551_v7  ;;  %564 = vmatpush.bf16.msra.mxu3 %v551_v7  ;;  %v247_v50 = vrot.slane %v244_v49, 2  ;;  %v248_v51 = vrot.slane %v244_v49, 3  ;;  %v249_v54 = vrot.slane %v244_v49, 4  ;;  %v253_v55 = vperm.slane %v244_v49, 0 }
  0x1e   :  { %381 = vmatpush.bf16.msra.mxu1 %v559_v33  ;;  %v246_v56 = vrot.slane %v244_v49, 1  ;;  %v250_v62 = vrot.slane %v244_v49, 5  ;;  %v251_v1 = vrot.slane %v244_v49, 6  ;;  %v252_v2 = vrot.slane %v244_v49, 7 }
  0x1f   :  { %101 = vrot.lane.b32.xlu0 %v780_v5, %s727_s23  ;;  %108 = vrot.lane.b32.xlu2 %v780_v5, %s734_s2  ;;  %v255_v57 = vperm.slane %v247_v50, 0  ;;  %v256_v58 = vperm.slane %v248_v51, 0  ;;  %v257_v59 = vperm.slane %v249_v54, 0 }
  0x20   :  { %119 = vrot.lane.b32.xlu1 %v477_v10, %s735_s3  ;;  %197 = vmatpush.bf16.msra.mxu0 %v550_v11  ;;  %v254_v61 = vperm.slane %v246_v56, 0 }
  0x21   :  { %565 = vmatpush.bf16.msra.mxu2 %v550_v11  ;;  %566 = vmatpush.bf16.msra.mxu3 %v550_v11 }
  0x22   :  { %382 = vmatpush.bf16.msra.mxu1 %v558_v34 }
  0x24   :  { %198 = vmatpush.bf16.msra.mxu0 %v549_v12 }
  0x25   :  { %567 = vmatpush.bf16.msra.mxu2 %v549_v12  ;;  %568 = vmatpush.bf16.msra.mxu3 %v549_v12  ;;  %v258_v12 = vperm.slane %v250_v62, 0 }
  0x26   :  { %383 = vmatpush.bf16.msra.mxu1 %v557_v38 }
  0x27   :  { %123 = vrot.lane.b32.xlu0 %v477_v10, %s727_s23  ;;  %92 = vrot.lane.b32.xlu2 %v469_v3, %s735_s3 }
  0x28   :  { %127 = vrot.lane.b32.xlu1 %v477_v10, %s734_s2  ;;  %199 = vmatpush.bf16.msra.mxu0 %v548_v13 }
  0x29   :  { %569 = vmatpush.bf16.msra.mxu2 %v548_v13  ;;  %570 = vmatpush.bf16.msra.mxu3 %v548_v13 }
  0x2a   :  { %384 = vmatpush.bf16.msra.mxu1 %v556_v39 }
  0x2c   :  { %200 = vmatpush.bf16.msra.mxu0 %v547_v14 }
  0x2d   :  { %571 = vmatpush.bf16.msra.mxu2 %v547_v14  ;;  %572 = vmatpush.bf16.msra.mxu3 %v547_v14 }
  0x2e   :  { %385 = vmatpush.bf16.msra.mxu1 %v555_v42 }
  0x30   :  { %201 = vmatpush.bf16.msra.mxu0 %v546_v15 }
  0x31   :  { %573 = vmatpush.bf16.msra.mxu2 %v546_v15  ;;  %574 = vmatpush.bf16.msra.mxu3 %v546_v15  ;;  %v259_v15 = vperm.slane %v251_v1, 0 }
  0x32   :  { %386 = vmatpush.bf16.msra.mxu1 %v554_v44 }
  0x34   :  { %202 = vmatpush.bf16.msra.mxu0 %v545_v16 }
  0x35   :  { %575 = vmatpush.bf16.msra.mxu2 %v545_v16  ;;  %576 = vmatpush.bf16.msra.mxu3 %v545_v16  ;;  %v260_v16 = vperm.slane %v252_v2, 0 }
  0x36   :  { %387 = vmatpush.bf16.msra.mxu1 %v553_v45 }
  0x37   :  { %203 = vmatmul.bf16.vlgmr.msra.gmra.mxu0 %v469_v3 }
  0x71   :  { %v107_v17 = vpop.permute.xlu2 %106 }
  0x79   :  { %v109_v18 = vpop.permute.xlu2 %108 }
  0x7a   :  { %v111_v28 = vsel %vm110_vm2, %v107_v17, %v109_v18 }
  0x81   :  { %v93_v19 = vpop.permute.xlu2 %92 }
  0x89   :  { %v100_v20 = vpop.permute.xlu0 %99 }
  0x8a   :  { %v95_v21 = vpop.permute.xlu1 %94 }
  0x8b   :  { %v97_v22 = vsel %vm96_vm0, %v93_v19, %v95_v21 }
  0x8c   :  { %208 = vmatmul.bf16.gmra.mxu0 %v97_v22 }
  0x91   :  { %v102_v23 = vpop.permute.xlu0 %101 }
  0x92   :  { %v120_v24 = vpop.permute.xlu1 %119  ;;  %v104_v25 = vsel %vm103_vm1, %v100_v20, %v102_v23 }
  0x93   :  { %213 = vmatmul.bf16.vlgmr.msra.gmra.mxu2 %v104_v25  ;;  %v121_v26 = vsel %vm96_vm0, %v95_v21, %v120_v24 }
  0x94   :  { %228 = vmatmul.bf16.vlgmr.msra.gmra.mxu3 %v121_v26 }
  0x99   :  { %v124_v27 = vpop.permute.xlu0 %123 }
  0x9a   :  { %v125_v29 = vsel %vm103_vm1, %v102_v23, %v124_v27  ;;  %v128_v30 = vpop.permute.xlu1 %127 }
  0x9b   :  { %v129_v31 = vsel %vm110_vm2, %v109_v18, %v128_v30 }
  0xa3   :  { %218 = vmatmul.bf16.gmra.mxu2 %v111_v28 }
  0xa4   :  { %233 = vmatmul.bf16.gmra.mxu3 %v125_v29 }
  0xb3   :  { %223 = vmatmul.bf16.gmra.mxu2 %v780_v5 }
  0xb4   :  { %238 = vmatmul.bf16.gmra.mxu3 %v129_v31  ;;  %v204_v36 = vpop.f32.mrf.mxu0 }
  0xb5   :  { %v269_v60 = vadd.f32 %v253_v55, %v204_v36 }
  0xb7   :  { %v285_v9 = vmax.f32 %v269_v60, 0.0 }
  0xbc   :  { %v206_v43 = vpop.f32.mrf.mxu0 }
  0xbd   :  { %v270_v5 = vadd.f32 %v253_v55, %v206_v43  ;;  %v394_v55 = vlaneseq }
  0xbf   :  { %v286_v18 = vmax.f32 %v270_v5, 0.0  ;;  %v395_v56 = vand.u32 127, %v394_v55 }
  0xc1   :  { %vm396_vm3 = vcmp.lt.s32.totalorder %v395_v56, 3 }
 0x109   :  { %v209_v48 = vpop.f32.mrf.mxu0 }
 0x10a   :  { %v271_v10 = vadd.f32 %v254_v61, %v209_v48 }
 0x10c   :  { %v287_v21 = vmax.f32 %v271_v10, 0.0 }
 0x111   :  { %v211_v63 = vpop.f32.mrf.mxu0 }
 0x112   :  { %v272_v11 = vadd.f32 %v254_v61, %v211_v63 }
 0x114   :  { %v288_v22 = vmax.f32 %v272_v11, 0.0 }
 0x116   :  { %v214_v35 = vpop.f32.mrf.mxu2 }
 0x117   :  { %v229_v37 = vpop.f32.mrf.mxu3  ;;  %v273_v0 = vadd.f32 %v255_v57, %v214_v35 }
 0x118   :  { %v279_v23 = vadd.f32 %v258_v12, %v229_v37 }
 0x119   :  { %v289_v13 = vmax.f32 %v273_v0, 0.0 }
 0x11a   :  { %v295_v36 = vmax.f32 %v279_v23, 0.0 }
 0x11b   :  { %v301_v25 = vmax.f32 %v285_v9, %v289_v13 }
 0x11e   :  { %v216_v40 = vpop.f32.mrf.mxu2 }
 0x11f   :  { %v231_v41 = vpop.f32.mrf.mxu3  ;;  %v274_v14 = vadd.f32 %v255_v57, %v216_v40 }
 0x120   :  { %v280_v24 = vadd.f32 %v258_v12, %v231_v41 }
 0x121   :  { %v290_v26 = vmax.f32 %v274_v14, 0.0 }
 0x122   :  { %v296_v38 = vmax.f32 %v280_v24, 0.0 }
 0x123   :  { %v308_v40 = vmax.f32 %v286_v18, %v290_v26 }
 0x126   :  { %v219_v46 = vpop.f32.mrf.mxu2 }
 0x127   :  { %v234_v47 = vpop.f32.mrf.mxu3  ;;  %v275_v3 = vadd.f32 %v256_v58, %v219_v46 }
 0x128   :  { %v281_v27 = vadd.f32 %v259_v15, %v234_v47 }
 0x129   :  { %v291_v17 = vmax.f32 %v275_v3, 0.0 }
 0x12a   :  { %v297_v42 = vmax.f32 %v281_v27, 0.0 }
 0x12b   :  { %v302_v29 = vmax.f32 %v287_v21, %v291_v17 }
 0x12d   :  { %v304_v37 = vmax.f32 %v302_v29, %v295_v36 }
 0x12e   :  { %v221_v52 = vpop.f32.mrf.mxu2 }
 0x12f   :  { %v236_v53 = vpop.f32.mrf.mxu3  ;;  %v276_v6 = vadd.f32 %v256_v58, %v221_v52 }
 0x130   :  { %v282_v32 = vadd.f32 %v259_v15, %v236_v53 }
 0x131   :  { %v292_v19 = vmax.f32 %v276_v6, 0.0 }
 0x132   :  { %v298_v45 = vmax.f32 %v282_v32, 0.0 }
 0x133   :  { %v309_v31 = vmax.f32 %v288_v22, %v292_v19 }
 0x135   :  { %v311_v48 = vmax.f32 %v309_v31, %v296_v38 }
 0x136   :  { %v224_v4 = vpop.f32.mrf.mxu2 }
 0x137   :  { %v277_v7 = vadd.f32 %v257_v59, %v224_v4  ;;  %v239_v8 = vpop.f32.mrf.mxu3 }
 0x138   :  { %v283_v28 = vadd.f32 %v260_v16, %v239_v8 }
 0x139   :  { %v293_v20 = vmax.f32 %v277_v7, 0.0 }
 0x13a   :  { %v299_v43 = vmax.f32 %v283_v28, 0.0 }
 0x13b   :  { %v303_v33 = vmax.f32 %v301_v25, %v293_v20 }
 0x13c   :  { %v306_v49 = vmax.f32 %v304_v37, %v299_v43 }
 0x13d   :  { %v305_v46 = vmax.f32 %v303_v33, %v297_v42 }
 0x13e   :  { %v226_v30 = vpop.f32.mrf.mxu2 }
 0x13f   :  { %v278_v34 = vadd.f32 %v257_v59, %v226_v30  ;;  %v241_v35 = vpop.f32.mrf.mxu3  ;;  %v307_v52 = vmax.f32 %v305_v46, %v306_v49 }
 0x140   :  { %v284_v39 = vadd.f32 %v260_v16, %v241_v35 }
 0x141   :  { %v294_v44 = vmax.f32 %v278_v34, 0.0 }
 0x142   :  { %v300_v41 = vmax.f32 %v284_v39, 0.0 }
 0x143   :  { %v310_v47 = vmax.f32 %v308_v40, %v294_v44 }
 0x144   :  { %v313_v51 = vmax.f32 %v311_v48, %v300_v41 }
 0x145   :  { %v312_v50 = vmax.f32 %v310_v47, %v298_v45 }
 0x147   :  { %v314_v53 = vmax.f32 %v312_v50, %v313_v51 }
 0x149   :  { %v315_v54 = vpack.c.bf16 %v314_v53, %v307_v52 }
 0x14b   :  { %388 = vmatmul.bf16.vlgmr.msra.gmra.mxu1 %v315_v54 }
 0x1c8   :  { %v389_v57 = vpop.f32.mrf.mxu1 }
 0x1c9   :  { %v397_v58 = vsel %vm396_vm3, %v389_v57, -1e+30 }
 0x1ca   :  { %399 = vmax.xlane.f32.xlu0 %v397_v58 }
 0x1d0   :  { %v391_v59 = vpop.f32.mrf.mxu1 }
 0x1d1   :  { %v398_v60 = vsel %vm396_vm3, %v391_v59, -1e+30 }
 0x1d2   :  { %401 = vmax.xlane.f32.xlu1 %v398_v60 }
 0x23d   :  { %v400_v61 = vpop.xlane.xlu0 %399 }
 0x23e   :  { %v403_v62 = vsub.f32 %v397_v58, %v400_v61 }
 0x240   :  { %v405_v63 = vmul.f32 1.442695, %v403_v62 }
 0x242   :  { %590 = vpow2.f32 %v405_v63 }
 0x245   :  { %v402_v0 = vpop.xlane.xlu1 %401 }
 0x246   :  { %v404_v1 = vsub.f32 %v398_v60, %v402_v0 }
 0x248   :  { %v591_v2 = vpop.eup %590  ;;  %v407_v3 = vmul.f32 1.442695, %v404_v1 }
 0x249   :  { %409 = vadd.xlane.f32.xlu2 %v591_v2 }
 0x24a   :  { %592 = vpow2.f32 %v407_v3 }
 0x250   :  { %v593_v4 = vpop.eup %592 }
 0x251   :  { %411 = vadd.xlane.f32.xlu2 %v593_v4 }
 0x2bc   :  { %v410_v5 = vpop.xlane.xlu2 %409 }
 0x2bd   :  { %594 = vrcp.f32 %v410_v5  ;;  %v424_v10 = vand.u32 2147483648, %v410_v5  ;;  %v422_v12 = vand.u32 2147483647, %v410_v5  ;;  %vm418_vm5 = vweird.f32 %v410_v5 }
 0x2bf   :  { %v425_v15 = vor.u32 1.1754944e-38, %v424_v10  ;;  %vm423_vm7 = vcmp.eq.f32.partialorder %v422_v12, 8.507059e+37 }
 0x2c3   :  { %v595_v6 = vpop.eup %594 }
 0x2c4   :  { %v414_v7 = vmul.f32 %v595_v6, %v410_v5  ;;  %v412_v8 = vpop.xlane.xlu2 %411  ;;  %vm419_vm4 = vweird.f32 %v595_v6 }
 0x2c5   :  { %596 = vrcp.f32 %v412_v8  ;;  %vm420_vm6 = vmor %vm418_vm5, %vm419_vm4  ;;  %v439_v21 = vand.u32 2147483648, %v412_v8  ;;  %v437_v23 = vand.u32 2147483647, %v412_v8  ;;  %vm433_vm9 = vweird.f32 %v412_v8 }
 0x2c6   :  { %v415_v9 = vsub.f32 1.0, %v414_v7 }
 0x2c7   :  { %v440_v25 = vor.u32 1.1754944e-38, %v439_v21  ;;  %vm438_vm11 = vcmp.eq.f32.partialorder %v437_v23, 8.507059e+37 }
 0x2c8   :  { %v416_v11 = vmul.f32 %v595_v6, %v415_v9 }
 0x2ca   :  { %v417_v13 = vadd.f32 %v595_v6, %v416_v11 }
 0x2cb   :  { %v597_v14 = vpop.eup %596 }
 0x2cc   :  { %v421_v16 = vsel %vm420_vm6, %v595_v6, %v417_v13  ;;  %v429_v17 = vmul.f32 %v597_v14, %v412_v8  ;;  %vm434_vm8 = vweird.f32 %v597_v14 }
 0x2cd   :  { %v426_v18 = vsel %vm423_vm7, %v425_v15, %v421_v16  ;;  %vm435_vm10 = vmor %vm433_vm9, %vm434_vm8 }
 0x2ce   :  { %v427_v19 = vmul.f32 %v591_v2, %v426_v18  ;;  %v430_v20 = vsub.f32 1.0, %v429_v17 }
 0x2d0   :  { %443 = vst [vmem:[#allocation10] sm:$0xff] %v427_v19  ;;  %v431_v22 = vmul.f32 %v597_v14, %v430_v20 }
 0x2d2   :  { %v432_v24 = vadd.f32 %v597_v14, %v431_v22 }
 0x2d4   :  { %v436_v26 = vsel %vm435_vm10, %v597_v14, %v432_v24 }
 0x2d5   :  { %v441_v27 = vsel %vm438_vm11, %v440_v25, %v436_v26 }
 0x2d6   :  { %v442_v28 = vmul.f32 %v593_v4, %v441_v27 }
 0x2d8   :  { %444 = vst [vmem:[#allocation10 + $0x8] sm:$0xff] %v442_v28 }
 0x2d9   :  { %457 = dma.vmem_to_hbm [thread:$0]  %s450_s12, 256, %s452_s15, [#allocation4], %s737_s16, %s737_s16, %s738_s17  }
 0x2da   :  { %724 = dma.done.wait [#allocation4], 256  }
 0x2db   :  { %725 = vsyncadd [#allocation4], 4294967040 }
 0x2dc   :  { %462 = vsyncpa [#allocation3], 1 }
 0x2dd   :  { %463 = vsyncpa [#allocation6], 1 }
 0x2de   :  { %464 = vsyncpa [#allocation9], 1 }
 0x2df   :  { %465 = vsyncpa [#allocation4], 1 }

</bundles_post_ra>
